<compile_context>
chip_gen: v7x
topology: tpu7x:2x2x1
jax: 0.10.0
libtpu: 0.0.40
codegen_flags: <defaults>
</compile_context>

<pallas_src>
import jax
import jax.numpy as jnp
from jax.experimental import pallas as pl
from jax.experimental.pallas import tpu as pltpu

HIDDEN_SIZE = 64
WINDOW_SIZE = 7
INPUT_SIZE = WINDOW_SIZE + 2   # 9
NUM_LAYERS = 2                 # hard-coded as two explicit layers in the kernel
LANES = 128                    # vreg lane width
BATCH_PAD = 8                  # one full sublane group


def _rnn_kernel(x_ref, w_ref, b_ref, out_ref):
    """x_ref:  (T*Bp, Ip)  time-major, batch/feature zero-padded.
    w_ref:  (3H+Ip, 128) slab = [W01 ; [Whh1^T|0] ; Wfc_pad ; [Wih0^T|0]].
    b_ref:  (8, 128)     row0=[b_ih0+b_hh0|0], row1=[b_ih1+b_hh1|0], row2=bfc.
    out_ref:(Bp, 128)    column 0 carries the fc output."""
    Bp = out_ref.shape[0]
    H = w_ref.shape[1] // 2
    Ip = x_ref.shape[1]
    T = x_ref.shape[0] // Bp

    # ---- One-time unpack of the slabs (static slices, outside the time loop).
    w01 = w_ref[0:H, :]                      # (H, 2H): [Whh0^T | Wih1^T]
    whh1 = w_ref[H:2 * H, 0:H]               # (H, H):  Whh1^T
    wfc = w_ref[2 * H:3 * H, :]              # (H, 128): col 0 = W_fc^T
    wih0 = w_ref[3 * H:3 * H + Ip, 0:H]      # (Ip, H): W_ih0^T (zero pad rows)
    b0 = b_ref[0:1, 0:H]                     # b_ih0 + b_hh0
    b1 = b_ref[1:2, 0:H]                     # b_ih1 + b_hh1
    bfc = b_ref[2:3, :]                      # (1, 128), lane 0 = b_fc

    # ---- Hoisted layer-0 input projection for ALL timesteps: one MXU matmul,
    # kept as a register value (no VMEM scratch round-trip).
    xproj = jnp.dot(x_ref[...], wih0, preferred_element_type=jnp.float32) + b0

    # ---- Register-resident recurrence state (zeros = torch.zeros h0 init).
    rec0 = jnp.zeros((Bp, H), jnp.float32)   # h0(t-1) @ Whh0^T
    h1 = jnp.zeros((Bp, H), jnp.float32)

    # ---- Fully-unrolled time loop (T static, tiny state, no reg pressure).
    for t in range(T):
        # Layer-1 recurrent term only needs h1(t-1): issue before layer-0's
        # tanh so this MXU pass is hidden under the critical h0 chain.
        rec1 = jnp.dot(h1, whh1, preferred_element_type=jnp.float32)
        h0 = jnp.tanh(xproj[t * Bp:(t + 1) * Bp, :] + rec0)
        # Single N-fused dot: lanes 0:H feed layer-0 at step t+1 (free slice on
        # the critical chain), lanes H:2H feed layer-1 at step t (has slack).
        p = jnp.dot(h0, w01, preferred_element_type=jnp.float32)
        rec0 = p[:, 0:H]
        h1 = jnp.tanh(p[:, H:] + rec1 + b1)

    # ---- fc on the last top-layer hidden; lane-dense (Bp, 128) store.
    out_ref[...] = (jnp.dot(h1, wfc, preferred_element_type=jnp.float32)
                    + bfc).astype(out_ref.dtype)


def pack_params(params):
    """One-time weight prep: transpose / fuse / pad into two 128-lane slabs."""
    H = params["whh_l0"].shape[0]
    I = params["wih_l0"].shape[1]
    Ip = ((I + 7) // 8) * 8
    assert 2 * H == LANES, "packing assumes hidden_size == 64"
    f32 = jnp.float32

    w01 = jnp.concatenate([params["whh_l0"].T, params["wih_l1"].T],
                          axis=1).astype(f32)                          # (H, 2H)
    whh1 = jnp.zeros((H, LANES), f32).at[:, :H].set(params["whh_l1"].T)
    wfc = jnp.zeros((H, LANES), f32).at[:, 0].set(params["w_fc"][0])
    wih0 = jnp.zeros((Ip, LANES), f32).at[:I, :H].set(params["wih_l0"].T)
    w_slab = jnp.concatenate([w01, whh1, wfc, wih0], axis=0)           # (3H+Ip, 128)

    b_slab = jnp.zeros((8, LANES), f32)
    b_slab = b_slab.at[0, :H].set(params["bih_l0"] + params["bhh_l0"])
    b_slab = b_slab.at[1, :H].set(params["bih_l1"] + params["bhh_l1"])
    b_slab = b_slab.at[2, 0].set(params["b_fc"][0])
    return {"w_slab": w_slab, "b_slab": b_slab}


def rnn_model_forward(x, packed):
    """x: (B, T, I) float32, batch_first like the PyTorch module."""
    B, T, I = x.shape
    w_slab, b_slab = packed["w_slab"], packed["b_slab"]
    H = w_slab.shape[1] // 2
    Ip = w_slab.shape[0] - 3 * H
    Bp = BATCH_PAD

    # Time-major; pad batch -> 8 sublanes and features -> Ip. Pad rows are
    # zero (stay finite through the recurrence) and are sliced away below.
    x_p = jnp.zeros((T, Bp, Ip), jnp.float32)
    x_p = x_p.at[:, :B, :I].set(jnp.swapaxes(x, 0, 1))
    x_tm = x_p.reshape(T * Bp, Ip)

    # All operands (< 110 KB total) live fully in VMEM; no grid/tiling needed.
    # TODO(synk): for large batch on v7x add a leading grid axis over batch
    # shards with dimension_semantics=("parallel",) to use both TensorCores;
    # for large T*B*I switch x to memory_space=pl.ANY with double-buffered
    # timestep-chunk DMA and budget vmem_limit_bytes for v7x's 64 MiB VMEM.
    vmem = pl.BlockSpec(memory_space=pltpu.MemorySpace.VMEM)
    out = pl.pallas_call(
        _rnn_kernel,
        out_shape=jax.ShapeDtypeStruct((Bp, LANES), jnp.float32),
        in_specs=[vmem, vmem, vmem],
        out_specs=vmem,
    )(x_tm, w_slab, b_slab)
    return out[:B, :1]


def init_params(key, input_size=INPUT_SIZE, hidden_size=HIDDEN_SIZE):
    """Deterministic init mirroring PyTorch's default U(-1/sqrt(H), 1/sqrt(H))."""
    ks = jax.random.split(key, 10)
    kr = 1.0 / jnp.sqrt(hidden_size)      # RNN weights/biases
    kf = 1.0 / jnp.sqrt(hidden_size)      # fc: fan_in = hidden_size
    u = lambda k, shape, bound: jax.random.uniform(
        k, shape, jnp.float32, minval=-bound, maxval=bound)
    return {
        "wih_l0": u(ks[0], (hidden_size, input_size), kr),
        "whh_l0": u(ks[1], (hidden_size, hidden_size), kr),
        "bih_l0": u(ks[2], (hidden_size,), kr),
        "bhh_l0": u(ks[3], (hidden_size,), kr),
        "wih_l1": u(ks[4], (hidden_size, hidden_size), kr),
        "whh_l1": u(ks[5], (hidden_size, hidden_size), kr),
        "bih_l1": u(ks[6], (hidden_size,), kr),
        "bhh_l1": u(ks[7], (hidden_size,), kr),
        "w_fc":   u(ks[8], (1, hidden_size), kf),
        "b_fc":   u(ks[9], (1,), kf),
    }


def rnn_model_reference(x, params):
    """Pure-JAX reference with identical semantics (for verification)."""
    B, T, I = x.shape
    H = params["whh_l0"].shape[0]
    h0 = jnp.zeros((B, H), jnp.float32)
    h1 = jnp.zeros((B, H), jnp.float32)
    for t in range(T):
        xt = x[:, t, :]
        h0 = jnp.tanh(xt @ params["wih_l0"].T + params["bih_l0"]
                      + h0 @ params["whh_l0"].T + params["bhh_l0"])
        h1 = jnp.tanh(h0 @ params["wih_l1"].T + params["bih_l1"]
                      + h1 @ params["whh_l1"].T + params["bhh_l1"])
    return h1 @ params["w_fc"].T + params["b_fc"]


if __name__ == "__main__":
    key = jax.random.PRNGKey(0)
    k_param, k_x = jax.random.split(key)

    B, T = 2, 8
    params = init_params(k_param)
    packed = pack_params(params)          # one-time weight packing
    x = jax.random.normal(k_x, (B, T, INPUT_SIZE), jnp.float32)

    fwd = jax.jit(rnn_model_forward)      # fuses the tiny x-padding prep ops
    out = jax.block_until_ready(fwd(x, packed))

    ref = rnn_model_reference(x, params)
    assert out.shape == (B, 1)
    assert jnp.allclose(out, ref, atol=1e-4, rtol=1e-4), (out, ref)

    print("KERNEL_OK")
</pallas_src>

<mosaic_0001>
module attributes {stable_mosaic.version = 11 : i64} {
  func.func @_rnn_kernel(%arg0: memref<64x16xf32, #tpu.memory_space<vmem>>, %arg1: memref<208x128xf32, #tpu.memory_space<vmem>>, %arg2: memref<8x128xf32, #tpu.memory_space<vmem>>, %arg3: memref<8x128xf32, #tpu.memory_space<vmem>>) attributes {dimension_semantics = [], scalar_prefetch = 0 : i64, scratch_operands = 0 : i64, tpu.core_type = #tpu.core_type<tc>} {
    %c0 = arith.constant 0 : index
    %c0_0 = arith.constant 0 : index
    %0 = vector.load %arg1[%c0, %c0_0] : memref<208x128xf32, #tpu.memory_space<vmem>>, vector<64x128xf32>
    %c64 = arith.constant 64 : index
    %c0_1 = arith.constant 0 : index
    %1 = vector.load %arg1[%c64, %c0_1] : memref<208x128xf32, #tpu.memory_space<vmem>>, vector<64x64xf32>
    %c128 = arith.constant 128 : index
    %c0_2 = arith.constant 0 : index
    %2 = vector.load %arg1[%c128, %c0_2] : memref<208x128xf32, #tpu.memory_space<vmem>>, vector<64x128xf32>
    %c192 = arith.constant 192 : index
    %c0_3 = arith.constant 0 : index
    %3 = vector.load %arg1[%c192, %c0_3] : memref<208x128xf32, #tpu.memory_space<vmem>>, vector<16x64xf32>
    %c0_4 = arith.constant 0 : index
    %c0_5 = arith.constant 0 : index
    %4 = vector.load %arg2[%c0_4, %c0_5] : memref<8x128xf32, #tpu.memory_space<vmem>>, vector<1x64xf32>
    %c1 = arith.constant 1 : index
    %c0_6 = arith.constant 0 : index
    %5 = vector.load %arg2[%c1, %c0_6] : memref<8x128xf32, #tpu.memory_space<vmem>>, vector<1x64xf32>
    %c2 = arith.constant 2 : index
    %c0_7 = arith.constant 0 : index
    %6 = vector.load %arg2[%c2, %c0_7] : memref<8x128xf32, #tpu.memory_space<vmem>>, vector<1x128xf32>
    %c0_8 = arith.constant 0 : index
    %c0_9 = arith.constant 0 : index
    %7 = vector.load %arg0[%c0_8, %c0_9] : memref<64x16xf32, #tpu.memory_space<vmem>>, vector<64x16xf32>
    %cst = arith.constant dense<0.000000e+00> : vector<64x64xf32>
    %8 = tpu.matmul %7, %3, %cst {dimension_numbers = #tpu.dot_dimension_numbers<[1], [0], [0], [1], [0, 0, 1, 1], [], []>} : vector<64x16xf32>, vector<16x64xf32>, vector<64x64xf32> -> vector<64x64xf32>
    %9 = vector.broadcast %4 : vector<1x64xf32> to vector<64x64xf32>
    %10 = arith.addf %8, %9 : vector<64x64xf32>
    %cst_10 = arith.constant 0.000000e+00 : f32
    %11 = vector.broadcast %cst_10 : f32 to vector<8x64xf32>
    %cst_11 = arith.constant 0.000000e+00 : f32
    %12 = vector.broadcast %cst_11 : f32 to vector<8x64xf32>
    %cst_12 = arith.constant dense<0.000000e+00> : vector<8x64xf32>
    %13 = tpu.matmul %12, %1, %cst_12 {dimension_numbers = #tpu.dot_dimension_numbers<[1], [0], [0], [1], [0, 0, 1, 1], [], []>} : vector<8x64xf32>, vector<64x64xf32>, vector<8x64xf32> -> vector<8x64xf32>
    %14 = vector.extract_strided_slice %10 {offsets = [0, 0], sizes = [8, 64], strides = [1, 1]} : vector<64x64xf32> to vector<8x64xf32>
    %15 = arith.addf %14, %11 : vector<8x64xf32>
    %16 = math.tanh %15 : vector<8x64xf32>
    %cst_13 = arith.constant dense<0.000000e+00> : vector<8x128xf32>
    %17 = tpu.matmul %16, %0, %cst_13 {dimension_numbers = #tpu.dot_dimension_numbers<[1], [0], [0], [1], [0, 0, 1, 1], [], []>} : vector<8x64xf32>, vector<64x128xf32>, vector<8x128xf32> -> vector<8x128xf32>
    %18 = vector.extract_strided_slice %17 {offsets = [0, 0], sizes = [8, 64], strides = [1, 1]} : vector<8x128xf32> to vector<8x64xf32>
    %19 = vector.extract_strided_slice %17 {offsets = [0, 64], sizes = [8, 64], strides = [1, 1]} : vector<8x128xf32> to vector<8x64xf32>
    %20 = arith.addf %19, %13 : vector<8x64xf32>
    %21 = vector.broadcast %5 : vector<1x64xf32> to vector<8x64xf32>
    %22 = arith.addf %20, %21 : vector<8x64xf32>
    %23 = math.tanh %22 : vector<8x64xf32>
    %cst_14 = arith.constant dense<0.000000e+00> : vector<8x64xf32>
    %24 = tpu.matmul %23, %1, %cst_14 {dimension_numbers = #tpu.dot_dimension_numbers<[1], [0], [0], [1], [0, 0, 1, 1], [], []>} : vector<8x64xf32>, vector<64x64xf32>, vector<8x64xf32> -> vector<8x64xf32>
    %25 = vector.extract_strided_slice %10 {offsets = [8, 0], sizes = [8, 64], strides = [1, 1]} : vector<64x64xf32> to vector<8x64xf32>
    %26 = arith.addf %25, %18 : vector<8x64xf32>
    %27 = math.tanh %26 : vector<8x64xf32>
    %cst_15 = arith.constant dense<0.000000e+00> : vector<8x128xf32>
    %28 = tpu.matmul %27, %0, %cst_15 {dimension_numbers = #tpu.dot_dimension_numbers<[1], [0], [0], [1], [0, 0, 1, 1], [], []>} : vector<8x64xf32>, vector<64x128xf32>, vector<8x128xf32> -> vector<8x128xf32>
    %29 = vector.extract_strided_slice %28 {offsets = [0, 0], sizes = [8, 64], strides = [1, 1]} : vector<8x128xf32> to vector<8x64xf32>
    %30 = vector.extract_strided_slice %28 {offsets = [0, 64], sizes = [8, 64], strides = [1, 1]} : vector<8x128xf32> to vector<8x64xf32>
    %31 = arith.addf %30, %24 : vector<8x64xf32>
    %32 = vector.broadcast %5 : vector<1x64xf32> to vector<8x64xf32>
    %33 = arith.addf %31, %32 : vector<8x64xf32>
    %34 = math.tanh %33 : vector<8x64xf32>
    %cst_16 = arith.constant dense<0.000000e+00> : vector<8x64xf32>
    %35 = tpu.matmul %34, %1, %cst_16 {dimension_numbers = #tpu.dot_dimension_numbers<[1], [0], [0], [1], [0, 0, 1, 1], [], []>} : vector<8x64xf32>, vector<64x64xf32>, vector<8x64xf32> -> vector<8x64xf32>
    %36 = vector.extract_strided_slice %10 {offsets = [16, 0], sizes = [8, 64], strides = [1, 1]} : vector<64x64xf32> to vector<8x64xf32>
    %37 = arith.addf %36, %29 : vector<8x64xf32>
    %38 = math.tanh %37 : vector<8x64xf32>
    %cst_17 = arith.constant dense<0.000000e+00> : vector<8x128xf32>
    %39 = tpu.matmul %38, %0, %cst_17 {dimension_numbers = #tpu.dot_dimension_numbers<[1], [0], [0], [1], [0, 0, 1, 1], [], []>} : vector<8x64xf32>, vector<64x128xf32>, vector<8x128xf32> -> vector<8x128xf32>
    %40 = vector.extract_strided_slice %39 {offsets = [0, 0], sizes = [8, 64], strides = [1, 1]} : vector<8x128xf32> to vector<8x64xf32>
    %41 = vector.extract_strided_slice %39 {offsets = [0, 64], sizes = [8, 64], strides = [1, 1]} : vector<8x128xf32> to vector<8x64xf32>
    %42 = arith.addf %41, %35 : vector<8x64xf32>
    %43 = vector.broadcast %5 : vector<1x64xf32> to vector<8x64xf32>
    %44 = arith.addf %42, %43 : vector<8x64xf32>
    %45 = math.tanh %44 : vector<8x64xf32>
    %cst_18 = arith.constant dense<0.000000e+00> : vector<8x64xf32>
    %46 = tpu.matmul %45, %1, %cst_18 {dimension_numbers = #tpu.dot_dimension_numbers<[1], [0], [0], [1], [0, 0, 1, 1], [], []>} : vector<8x64xf32>, vector<64x64xf32>, vector<8x64xf32> -> vector<8x64xf32>
    %47 = vector.extract_strided_slice %10 {offsets = [24, 0], sizes = [8, 64], strides = [1, 1]} : vector<64x64xf32> to vector<8x64xf32>
    %48 = arith.addf %47, %40 : vector<8x64xf32>
    %49 = math.tanh %48 : vector<8x64xf32>
    %cst_19 = arith.constant dense<0.000000e+00> : vector<8x128xf32>
    %50 = tpu.matmul %49, %0, %cst_19 {dimension_numbers = #tpu.dot_dimension_numbers<[1], [0], [0], [1], [0, 0, 1, 1], [], []>} : vector<8x64xf32>, vector<64x128xf32>, vector<8x128xf32> -> vector<8x128xf32>
    %51 = vector.extract_strided_slice %50 {offsets = [0, 0], sizes = [8, 64], strides = [1, 1]} : vector<8x128xf32> to vector<8x64xf32>
    %52 = vector.extract_strided_slice %50 {offsets = [0, 64], sizes = [8, 64], strides = [1, 1]} : vector<8x128xf32> to vector<8x64xf32>
    %53 = arith.addf %52, %46 : vector<8x64xf32>
    %54 = vector.broadcast %5 : vector<1x64xf32> to vector<8x64xf32>
    %55 = arith.addf %53, %54 : vector<8x64xf32>
    %56 = math.tanh %55 : vector<8x64xf32>
    %cst_20 = arith.constant dense<0.000000e+00> : vector<8x64xf32>
    %57 = tpu.matmul %56, %1, %cst_20 {dimension_numbers = #tpu.dot_dimension_numbers<[1], [0], [0], [1], [0, 0, 1, 1], [], []>} : vector<8x64xf32>, vector<64x64xf32>, vector<8x64xf32> -> vector<8x64xf32>
    %58 = vector.extract_strided_slice %10 {offsets = [32, 0], sizes = [8, 64], strides = [1, 1]} : vector<64x64xf32> to vector<8x64xf32>
    %59 = arith.addf %58, %51 : vector<8x64xf32>
    %60 = math.tanh %59 : vector<8x64xf32>
    %cst_21 = arith.constant dense<0.000000e+00> : vector<8x128xf32>
    %61 = tpu.matmul %60, %0, %cst_21 {dimension_numbers = #tpu.dot_dimension_numbers<[1], [0], [0], [1], [0, 0, 1, 1], [], []>} : vector<8x64xf32>, vector<64x128xf32>, vector<8x128xf32> -> vector<8x128xf32>
    %62 = vector.extract_strided_slice %61 {offsets = [0, 0], sizes = [8, 64], strides = [1, 1]} : vector<8x128xf32> to vector<8x64xf32>
    %63 = vector.extract_strided_slice %61 {offsets = [0, 64], sizes = [8, 64], strides = [1, 1]} : vector<8x128xf32> to vector<8x64xf32>
    %64 = arith.addf %63, %57 : vector<8x64xf32>
    %65 = vector.broadcast %5 : vector<1x64xf32> to vector<8x64xf32>
    %66 = arith.addf %64, %65 : vector<8x64xf32>
    %67 = math.tanh %66 : vector<8x64xf32>
    %cst_22 = arith.constant dense<0.000000e+00> : vector<8x64xf32>
    %68 = tpu.matmul %67, %1, %cst_22 {dimension_numbers = #tpu.dot_dimension_numbers<[1], [0], [0], [1], [0, 0, 1, 1], [], []>} : vector<8x64xf32>, vector<64x64xf32>, vector<8x64xf32> -> vector<8x64xf32>
    %69 = vector.extract_strided_slice %10 {offsets = [40, 0], sizes = [8, 64], strides = [1, 1]} : vector<64x64xf32> to vector<8x64xf32>
    %70 = arith.addf %69, %62 : vector<8x64xf32>
    %71 = math.tanh %70 : vector<8x64xf32>
    %cst_23 = arith.constant dense<0.000000e+00> : vector<8x128xf32>
    %72 = tpu.matmul %71, %0, %cst_23 {dimension_numbers = #tpu.dot_dimension_numbers<[1], [0], [0], [1], [0, 0, 1, 1], [], []>} : vector<8x64xf32>, vector<64x128xf32>, vector<8x128xf32> -> vector<8x128xf32>
    %73 = vector.extract_strided_slice %72 {offsets = [0, 0], sizes = [8, 64], strides = [1, 1]} : vector<8x128xf32> to vector<8x64xf32>
    %74 = vector.extract_strided_slice %72 {offsets = [0, 64], sizes = [8, 64], strides = [1, 1]} : vector<8x128xf32> to vector<8x64xf32>
    %75 = arith.addf %74, %68 : vector<8x64xf32>
    %76 = vector.broadcast %5 : vector<1x64xf32> to vector<8x64xf32>
    %77 = arith.addf %75, %76 : vector<8x64xf32>
    %78 = math.tanh %77 : vector<8x64xf32>
    %cst_24 = arith.constant dense<0.000000e+00> : vector<8x64xf32>
    %79 = tpu.matmul %78, %1, %cst_24 {dimension_numbers = #tpu.dot_dimension_numbers<[1], [0], [0], [1], [0, 0, 1, 1], [], []>} : vector<8x64xf32>, vector<64x64xf32>, vector<8x64xf32> -> vector<8x64xf32>
    %80 = vector.extract_strided_slice %10 {offsets = [48, 0], sizes = [8, 64], strides = [1, 1]} : vector<64x64xf32> to vector<8x64xf32>
    %81 = arith.addf %80, %73 : vector<8x64xf32>
    %82 = math.tanh %81 : vector<8x64xf32>
    %cst_25 = arith.constant dense<0.000000e+00> : vector<8x128xf32>
    %83 = tpu.matmul %82, %0, %cst_25 {dimension_numbers = #tpu.dot_dimension_numbers<[1], [0], [0], [1], [0, 0, 1, 1], [], []>} : vector<8x64xf32>, vector<64x128xf32>, vector<8x128xf32> -> vector<8x128xf32>
    %84 = vector.extract_strided_slice %83 {offsets = [0, 0], sizes = [8, 64], strides = [1, 1]} : vector<8x128xf32> to vector<8x64xf32>
    %85 = vector.extract_strided_slice %83 {offsets = [0, 64], sizes = [8, 64], strides = [1, 1]} : vector<8x128xf32> to vector<8x64xf32>
    %86 = arith.addf %85, %79 : vector<8x64xf32>
    %87 = vector.broadcast %5 : vector<1x64xf32> to vector<8x64xf32>
    %88 = arith.addf %86, %87 : vector<8x64xf32>
    %89 = math.tanh %88 : vector<8x64xf32>
    %cst_26 = arith.constant dense<0.000000e+00> : vector<8x64xf32>
    %90 = tpu.matmul %89, %1, %cst_26 {dimension_numbers = #tpu.dot_dimension_numbers<[1], [0], [0], [1], [0, 0, 1, 1], [], []>} : vector<8x64xf32>, vector<64x64xf32>, vector<8x64xf32> -> vector<8x64xf32>
    %91 = vector.extract_strided_slice %10 {offsets = [56, 0], sizes = [8, 64], strides = [1, 1]} : vector<64x64xf32> to vector<8x64xf32>
    %92 = arith.addf %91, %84 : vector<8x64xf32>
    %93 = math.tanh %92 : vector<8x64xf32>
    %cst_27 = arith.constant dense<0.000000e+00> : vector<8x128xf32>
    %94 = tpu.matmul %93, %0, %cst_27 {dimension_numbers = #tpu.dot_dimension_numbers<[1], [0], [0], [1], [0, 0, 1, 1], [], []>} : vector<8x64xf32>, vector<64x128xf32>, vector<8x128xf32> -> vector<8x128xf32>
    %95 = vector.extract_strided_slice %94 {offsets = [0, 64], sizes = [8, 64], strides = [1, 1]} : vector<8x128xf32> to vector<8x64xf32>
    %96 = arith.addf %95, %90 : vector<8x64xf32>
    %97 = vector.broadcast %5 : vector<1x64xf32> to vector<8x64xf32>
    %98 = arith.addf %96, %97 : vector<8x64xf32>
    %99 = math.tanh %98 : vector<8x64xf32>
    %cst_28 = arith.constant dense<0.000000e+00> : vector<8x128xf32>
    %100 = tpu.matmul %99, %2, %cst_28 {dimension_numbers = #tpu.dot_dimension_numbers<[1], [0], [0], [1], [0, 0, 1, 1], [], []>} : vector<8x64xf32>, vector<64x128xf32>, vector<8x128xf32> -> vector<8x128xf32>
    %101 = vector.broadcast %6 : vector<1x128xf32> to vector<8x128xf32>
    %102 = arith.addf %100, %101 : vector<8x128xf32>
    %c0_29 = arith.constant 0 : index
    %c0_30 = arith.constant 0 : index
    %103 = vector.load %arg3[%c0_29, %c0_30] : memref<8x128xf32, #tpu.memory_space<vmem>>, vector<8x128xf32>
    tpu.vector_store %arg3[%c0_29, %c0_30], %102 {strides = array<i32>} : memref<8x128xf32, #tpu.memory_space<vmem>>, vector<8x128xf32>,
    return
  }
}

</mosaic_0001>

<bundles_post_ra>
// kernel: rnn_model_forward.1
= control target key start
LH: loop header
LB: loop body
LE: loop exit
PB: predicated region body
PF: predicated region fallthrough
CT: control target
= control target key end

     0   :  { %8 = vsyncpa [#allocation3], 0  ;;  %s2347_s12 = smov [#allocation2]   ;;  %s2697_s0 = inlined_call_operand.vmem [shape: f32[64,16], index: 0, kind: input, shape index: {}]   ;;  %s2698_s1 = inlined_call_operand.hbm [shape: f32[208,128], index: 1, kind: input, shape index: {}]   ;;  %s2699_s2 = inlined_call_operand.vmem [shape: f32[8,128], index: 2, kind: input, shape index: {}]   ;;  %s2700_s3 = inlined_call_operand.vmem [shape: f32[8,128], index: 3, kind: output, shape index: {}]  }
   0x1   :  { %s16_s13 = sshll.u32 %s2347_s12, 4  ;;  %s2323_s16 = scalar_lea.hbm %s2698_s1, 3328  ;;  %s17_s13 = int_to_ptr.vmem [resolvable:$true] %s16_s13 }
   0x2   :  { %p2324_p0 = scmp.ne.s32.totalorder %s2698_s1, %s2323_s16  ;;  %p2327_p1 = scmp.lt.u32.totalorder %s2323_s16, %s2698_s1 }
   0x4   :  { %p2329_p2 = pnand %p2327_p1, %p2324_p0 }
   0x6   :  { %2332 = shalt.err (!%p2329_p2)
}
   0x7   :  { %s2333_s21 = scalar_lea.vmem %s17_s13, 3328  ;;  %p2338_p4 = scmp.lt.s32.totalorder %s17_s13, %s17_s13 }
   0x8   :  { %p2334_p3 = scmp.ne.s32.totalorder %s17_s13, %s2333_s21  ;;  %p2339_p5 = scmp.lt.s32.totalorder %s2333_s21, %s2333_s21 }
   0xa   :  { %p2340_p6 = por %p2339_p5, %p2338_p4 }
   0xc   :  { %p2341_p7 = pnand %p2340_p6, %p2334_p3 }
   0xe   :  { %2344 = shalt.err (!%p2341_p7)
}
   0xf   :  { %s2348_s22 = smov 128   ;;  %s2349_s23 = smov 8  }
  0x10   :  { %22 = dma.hbm_to_vmem [thread:$0]  %s2698_s1, 3328, %s17_s13, [#allocation3], %s2348_s22, %s2348_s22, %s2349_s23  }
  0x11   :  { %2345 = dma.done.wait [#allocation3], 3328  }
  0x12   :  { %2346 = vsyncadd [#allocation3], 4294963968  ;;  %v2350_v0 = vmov 0.0|0.0   ;;  %vm2351_vm0 = vmmov 0   ;;  %v2352_v1 = vmov 0.0   ;;  %vm69_vm1 = vcmask 130048  }
  0x13   :  { %2080 = vmatprep.subr.bf16.mxu1 %v2350_v0  ;;  %1769 = vmatprep.mubr.msk.f32.mxu1 %vm2351_vm0, %v2352_v1  ;;  %v52_v2 = vld [vmem:[#allocation2 + $0xc0] sm:$0xff]  ;;  %v53_v3 = vld [vmem:[#allocation2 + $0xc8] sm:$0xff]  ;;  %v38_v9 = vld [vmem:[#allocation2 + $0x50] sm:$0xff]  ;;  %vm199_vm2 = vcmask 523264  }
  0x14   :  { %v57_v4 = vld [vmem:[%s2697_s0] sm:$0xff]  ;;  %v2076_v5 = vpack.c.bf16 %v53_v3, %v52_v2  ;;  %v37_v7 = vld [vmem:[#allocation2 + $0x48] sm:$0xff]  ;;  %v39_v10 = vld [vmem:[#allocation2 + $0x58] sm:$0xff] }
  0x15   :  { %1741 = vmatprep.mubr.msk.f32.mxu0 %vm69_vm1, %v57_v4  ;;  %v36_v6 = vld [vmem:[#allocation2 + $0x40] sm:$0xff]  ;;  %v58_v11 = vld [vmem:[%s2697_s0 + $0x8] sm:$0xff]  ;;  %v2399_v12 = vpack.c.bf16 %v39_v10, %v38_v9  ;;  %v42_v19 = vld [vmem:[#allocation2 + $0x70] sm:$0xff] }
  0x16   :  { %v2393_v8 = vpack.c.bf16 %v37_v7, %v36_v6  ;;  %2077 = vmatprep.subr.bf16.mxu0 %v2076_v5  ;;  %v28_v13 = vld [vmem:[#allocation2] sm:$0xff]  ;;  %v29_v14 = vld [vmem:[#allocation2 + $0x8] sm:$0xff]  ;;  %v43_v20 = vld [vmem:[#allocation2 + $0x78] sm:$0xff] }
  0x17   :  { %2079 = vmatpush3.bf16.msra.mxu0 %v2076_v5  ;;  %v40_v15 = vld [vmem:[#allocation2 + $0x60] sm:$0xff]  ;;  %v41_v16 = vld [vmem:[#allocation2 + $0x68] sm:$0xff]  ;;  %v2403_v17 = vpack.c.bf16 %v29_v14, %v28_v13  ;;  %v2413_v21 = vpack.c.bf16 %v43_v20, %v42_v19  ;;  %v59_v22 = vld [vmem:[%s2697_s0 + $0x10] sm:$0xff] }
  0x18   :  { %2082 = vmatpush3.bf16.msra.mxu1 %v2393_v8  ;;  %2092 = vmatprep.subr.bf16.mxu0 %v2350_v0  ;;  %v2407_v18 = vpack.c.bf16 %v41_v16, %v40_v15  ;;  %v60_v23 = vld [vmem:[%s2697_s0 + $0x18] sm:$0xff]  ;;  %v30_v24 = vld [vmem:[#allocation2 + $0x10] sm:$0xff]  ;;  %v61_v27 = vld [vmem:[%s2697_s0 + $0x20] sm:$0xff] }
  0x19   :  { %2083 = vmatprep.subr.bf16.mxu1 %v2350_v0  ;;  %v31_v25 = vld [vmem:[#allocation2 + $0x18] sm:$0xff]  ;;  %v62_v28 = vld [vmem:[%s2697_s0 + $0x28] sm:$0xff]  ;;  %v32_v29 = vld [vmem:[#allocation2 + $0x20] sm:$0xff] }
  0x1a   :  { %1742 = vmatmul.mubr.msk.f32.vlgmr.msra.gmra.mrb[0].mxu0 %vm69_vm1, %v58_v11  ;;  %v2437_v26 = vpack.c.bf16 %v31_v25, %v30_v24  ;;  %v33_v30 = vld [vmem:[#allocation2 + $0x28] sm:$0xff]  ;;  %v63_v31 = vld [vmem:[%s2697_s0 + $0x30] sm:$0xff]  ;;  %v35_v34 = vld [vmem:[#allocation2 + $0x38] sm:$0xff] }
  0x1b   :  { %2094 = vmatpush3.bf16.msra.mxu0 %v2403_v17  ;;  %1744 = vmatprep.mubr.msk.f32.mxu0 %vm69_vm1, %v59_v22  ;;  %v2452_v32 = vpack.c.bf16 %v33_v30, %v32_v29  ;;  %v34_v33 = vld [vmem:[#allocation2 + $0x30] sm:$0xff]  ;;  %v64_v35 = vld [vmem:[%s2697_s0 + $0x38] sm:$0xff]  ;;  %v2470_v37 = vld [vmem:[%s2699_s2] ss:$0 sm:$0xff]  ;;  %s2353_s0 = smov 64  }
  0x1c   :  { %2085 = vmatpush3.bf16.msra.mxu1 %v2399_v12  ;;  %2095 = vmatprep.subr.bf16.mxu0 %v2350_v0  ;;  %v2459_v36 = vpack.c.bf16 %v35_v34, %v34_v33  ;;  %v1557_v44 = vld [vmem:[%s2699_s2 + $0x1] ss:$0 sm:$0xff] }
  0x1d   :  { %2086 = vmatprep.subr.bf16.mxu1 %v2350_v0 }
  0x1e   :  { %1745 = vmatmul.mubr.msk.f32.gmra.mrb[2].mxu0 %vm69_vm1, %v60_v23 }
  0x1f   :  { %2097 = vmatpush3.bf16.msra.mxu0 %v2437_v26  ;;  %1747 = vmatprep.mubr.msk.f32.mxu0 %vm69_vm1, %v61_v27 }
  0x20   :  { %2088 = vmatpush3.bf16.msra.mxu1 %v2407_v18  ;;  %2098 = vmatprep.subr.bf16.mxu0 %v2350_v0 }
  0x21   :  { %2089 = vmatprep.subr.bf16.mxu1 %v2350_v0 }
  0x22   :  { %1748 = vmatmul.mubr.msk.f32.gmra.mrb[4].mxu0 %vm69_vm1, %v62_v28 }
  0x23   :  { %1750 = vmatprep.mubr.msk.f32.mxu0 %vm69_vm1, %v63_v31  ;;  %2100 = vmatpush3.bf16.msra.mxu0 %v2452_v32 }
  0x24   :  { %2091 = vmatpush3.bf16.msra.mxu1 %v2413_v21  ;;  %2101 = vmatprep.subr.bf16.mxu0 %v2350_v0 }
  0x25   :  { %2104 = vmatprep.subr.bf16.mxu1 %v2350_v0 }
  0x26   :  { %1751 = vmatmul.mubr.msk.f32.gmra.mrb[6].mxu0 %vm69_vm1, %v64_v35 }
  0x27   :  { %1770 = vmatmul.mubr.f32.vlgmr.msra.gmra.mrb[0].mxu1 %v2352_v1  ;;  %1788 = vmatprep.mubr.msk.f32.mxu0 %vm2351_vm0, %v2352_v1 }
  0x28   :  { %2106 = vmatpush3.bf16.msra.mxu1 %v2393_v8  ;;  %1807 = vmatprep.mubr.msk.f32.mxu1 %vm2351_vm0, %v2352_v1 }
  0x29   :  { %2107 = vmatprep.subr.bf16.mxu1 %v2350_v0  ;;  %2103 = vmatpush3.bf16.msra.mxu0 %v2459_v36 }
  0x2a   :  { %2116 = vmatprep.subr.bf16.mxu0 %v2350_v0 }
  0x2c   :  { %2109 = vmatpush3.bf16.msra.mxu1 %v2399_v12 }
  0x2d   :  { %2110 = vmatprep.subr.bf16.mxu1 %v2350_v0 }
  0x30   :  { %2112 = vmatpush3.bf16.msra.mxu1 %v2407_v18 }
  0x31   :  { %2113 = vmatprep.subr.bf16.mxu1 %v2350_v0 }
  0x34   :  { %2115 = vmatpush3.bf16.msra.mxu1 %v2413_v21 }
  0x35   :  { %2128 = vmatprep.subr.bf16.mxu1 %v2350_v0 }
  0xed   :  { %v1743_v38 = vpop.f32.mrb[0].mxu0 }
  0xee   :  { %v160_v39 = vpop.f32.mrb[1].mxu0  ;;  %v166_v52 = vadd.f32 %v1743_v38, %v2470_v37 }
  0xef   :  { %v161_v40 = vadd.f32 %v2470_v37, %v160_v39 }
  0xf1   :  { %2291 = vtanh.f32 %v161_v40  ;;  %v1746_v45 = vpop.f32.mrb[2].mxu0 }
  0xf2   :  { %v170_v46 = vpop.f32.mrb[3].mxu0  ;;  %v176_v7 = vadd.f32 %v1746_v45, %v2470_v37 }
  0xf3   :  { %v171_v62 = vadd.f32 %v2470_v37, %v170_v46 }
  0xf5   :  { %v2489_v47 = vpop.f32.mrb[4].mxu0 }
  0xf6   :  { %v2491_v48 = vpop.f32.mrb[5].mxu0  ;;  %v186_v30 = vadd.f32 %v2489_v47, %v2470_v37 }
  0xf7   :  { %v181_v22 = vadd.f32 %v2470_v37, %v2491_v48 }
  0xf9   :  { %v2493_v49 = vpop.f32.mrb[6].mxu0 }
  0xfa   :  { %v269_v41 = vpop.f32.mrb[0].mxu1  ;;  %v2495_v50 = vpop.f32.mrb[7].mxu0 }
  0xfb   :  { %v1771_v42 = vpop.f32.mrb[1].mxu1  ;;  %349 = vrot.lane.b32.xlu0 %v269_v41, %s2353_s0  ;;  %v2292_v43 = vpop.eup %2291 }
  0xfc   :  { %1789 = vmatmul.mubr.msk.f32.vlgmr.msra.gmra.mrb[8].mxu0 %vm199_vm2, %v2292_v43  ;;  %v191_v43 = vadd.f32 %v2470_v37, %v2495_v50 }
  0xfd   :  { %2118 = vmatpush3.bf16.msra.mxu0 %v2403_v17  ;;  %1826 = vmatprep.mubr.msk.f32.mxu0 %vm2351_vm0, %v2352_v1 }
  0xfe   :  { %2119 = vmatprep.subr.bf16.mxu0 %v2350_v0 }
  0xff   :  { %358 = vrot.lane.b32.xlu0 %v1557_v44, %s2353_s0 }
 0x101   :  { %2121 = vmatpush3.bf16.msra.mxu0 %v2437_v26 }
 0x102   :  { %2122 = vmatprep.subr.bf16.mxu0 %v2350_v0 }
 0x105   :  { %2124 = vmatpush3.bf16.msra.mxu0 %v2452_v32 }
 0x106   :  { %2125 = vmatprep.subr.bf16.mxu0 %v2350_v0 }
 0x109   :  { %2127 = vmatpush3.bf16.msra.mxu0 %v2459_v36 }
 0x10a   :  { %2140 = vmatprep.subr.bf16.mxu0 %v2350_v0 }
 0x16d   :  { %v350_v51 = vpop.permute.xlu0 %349 }
 0x171   :  { %v2498_v54 = vpop.permute.xlu0 %358 }
 0x1cf   :  { %v344_v53 = vpop.f32.mrb[8].mxu0 }
 0x1d0   :  { %v352_v55 = vadd.f32 %v350_v51, %v344_v53  ;;  %v438_v56 = vadd.f32 %v344_v53, %v166_v52  ;;  %v1790_v57 = vpop.f32.mrb[9].mxu0 }
 0x1d2   :  { %2293 = vtanh.f32 %v438_v56  ;;  %v361_v58 = vadd.f32 %v2498_v54, %v352_v55 }
 0x1d4   :  { %2295 = vtanh.f32 %v361_v58 }
 0x1dc   :  { %v2294_v59 = vpop.eup %2293 }
 0x1dd   :  { %1827 = vmatmul.mubr.msk.f32.vlgmr.msra.gmra.mrb[10].mxu0 %vm199_vm2, %v2294_v59 }
 0x1de   :  { %v2296_v60 = vpop.eup %2295  ;;  %2142 = vmatpush3.bf16.msra.mxu0 %v2403_v17  ;;  %1864 = vmatprep.mubr.msk.f32.mxu0 %vm2351_vm0, %v2352_v1 }
 0x1df   :  { %364 = vrot.lane.b32.xlu1 %v2296_v60, %s2353_s0  ;;  %2143 = vmatprep.subr.bf16.mxu0 %v2350_v0 }
 0x1e2   :  { %2145 = vmatpush3.bf16.msra.mxu0 %v2437_v26 }
 0x1e3   :  { %2146 = vmatprep.subr.bf16.mxu0 %v2350_v0 }
 0x1e6   :  { %2148 = vmatpush3.bf16.msra.mxu0 %v2452_v32 }
 0x1e7   :  { %2149 = vmatprep.subr.bf16.mxu0 %v2350_v0 }
 0x1ea   :  { %2151 = vmatpush3.bf16.msra.mxu0 %v2459_v36 }
 0x1eb   :  { %2164 = vmatprep.subr.bf16.mxu0 %v2350_v0 }
 0x251   :  { %v365_v61 = vpop.permute.xlu1 %364 }
 0x252   :  { %1808 = vmatmul.mubr.msk.f32.vlgmr.msra.gmra.mrb[2].mxu1 %vm199_vm2, %v365_v61 }
 0x253   :  { %2130 = vmatpush3.bf16.msra.mxu1 %v2393_v8  ;;  %1845 = vmatprep.mubr.msk.f32.mxu1 %vm2351_vm0, %v2352_v1 }
 0x254   :  { %2131 = vmatprep.subr.bf16.mxu1 %v2350_v0 }
 0x257   :  { %2133 = vmatpush3.bf16.msra.mxu1 %v2399_v12 }
 0x258   :  { %2134 = vmatprep.subr.bf16.mxu1 %v2350_v0 }
 0x25b   :  { %2136 = vmatpush3.bf16.msra.mxu1 %v2407_v18 }
 0x25c   :  { %2137 = vmatprep.subr.bf16.mxu1 %v2350_v0 }
 0x25f   :  { %2139 = vmatpush3.bf16.msra.mxu1 %v2413_v21 }
 0x260   :  { %2152 = vmatprep.subr.bf16.mxu1 %v2350_v0 }
 0x2b0   :  { %v509_v63 = vpop.f32.mrb[10].mxu0 }
 0x2b1   :  { %v595_v2 = vadd.f32 %v509_v63, %v171_v62  ;;  %v1828_v3 = vpop.f32.mrb[11].mxu0 }
 0x2b3   :  { %2297 = vtanh.f32 %v595_v2 }
 0x2bd   :  { %v2298_v4 = vpop.eup %2297 }
 0x2be   :  { %1865 = vmatmul.mubr.msk.f32.vlgmr.msra.gmra.mrb[12].mxu0 %vm199_vm2, %v2298_v4 }
 0x2bf   :  { %2166 = vmatpush3.bf16.msra.mxu0 %v2403_v17  ;;  %1902 = vmatprep.mubr.msk.f32.mxu0 %vm2351_vm0, %v2352_v1 }
 0x2c0   :  { %2167 = vmatprep.subr.bf16.mxu0 %v2350_v0 }
 0x2c3   :  { %2169 = vmatpush3.bf16.msra.mxu0 %v2437_v26 }
 0x2c4   :  { %2170 = vmatprep.subr.bf16.mxu0 %v2350_v0 }
 0x2c7   :  { %2172 = vmatpush3.bf16.msra.mxu0 %v2452_v32 }
 0x2c8   :  { %2173 = vmatprep.subr.bf16.mxu0 %v2350_v0 }
 0x2cb   :  { %2175 = vmatpush3.bf16.msra.mxu0 %v2459_v36 }
 0x2cc   :  { %2188 = vmatprep.subr.bf16.mxu0 %v2350_v0 }
 0x325   :  { %v434_v5 = vpop.f32.mrb[2].mxu1 }
 0x326   :  { %514 = vrot.lane.b32.xlu1 %v434_v5, %s2353_s0  ;;  %v1809_v6 = vpop.f32.mrb[3].mxu1 }
 0x391   :  { %v666_v9 = vpop.f32.mrb[12].mxu0 }
 0x392   :  { %v752_v10 = vadd.f32 %v666_v9, %v176_v7  ;;  %v1866_v11 = vpop.f32.mrb[13].mxu0 }
 0x394   :  { %2299 = vtanh.f32 %v752_v10 }
 0x398   :  { %v515_v13 = vpop.permute.xlu1 %514 }
 0x399   :  { %v517_v14 = vadd.f32 %v515_v13, %v509_v63 }
 0x39b   :  { %v518_v15 = vadd.f32 %v517_v14, %v2498_v54 }
 0x39d   :  { %2301 = vtanh.f32 %v518_v15 }
 0x39e   :  { %v2300_v16 = vpop.eup %2299 }
 0x39f   :  { %1903 = vmatmul.mubr.msk.f32.vlgmr.msra.gmra.mrb[14].mxu0 %vm199_vm2, %v2300_v16 }
 0x3a0   :  { %2190 = vmatpush3.bf16.msra.mxu0 %v2403_v17  ;;  %1940 = vmatprep.mubr.msk.f32.mxu0 %vm2351_vm0, %v2352_v1 }
 0x3a1   :  { %2191 = vmatprep.subr.bf16.mxu0 %v2350_v0 }
 0x3a4   :  { %2193 = vmatpush3.bf16.msra.mxu0 %v2437_v26 }
 0x3a5   :  { %2194 = vmatprep.subr.bf16.mxu0 %v2350_v0 }
 0x3a7   :  { %v2302_v19 = vpop.eup %2301 }
 0x3a8   :  { %521 = vrot.lane.b32.xlu0 %v2302_v19, %s2353_s0  ;;  %2196 = vmatpush3.bf16.msra.mxu0 %v2452_v32  ;;  %v44_v19 = vld [vmem:[#allocation2 + $0x80] sm:$0xff] }
 0x3a9   :  { %2197 = vmatprep.subr.bf16.mxu0 %v2350_v0 }
 0x3ac   :  { %2199 = vmatpush3.bf16.msra.mxu0 %v2459_v36 }
 0x3ad   :  { %2212 = vmatprep.subr.bf16.mxu0 %v2350_v0 }
 0x41a   :  { %v522_v20 = vpop.permute.xlu0 %521 }
 0x41b   :  { %1846 = vmatmul.mubr.msk.f32.vlgmr.msra.gmra.mrb[4].mxu1 %vm199_vm2, %v522_v20  ;;  %v45_v20 = vld [vmem:[#allocation2 + $0x88] sm:$0xff] }
 0x41c   :  { %2154 = vmatpush3.bf16.msra.mxu1 %v2393_v8  ;;  %1883 = vmatprep.mubr.msk.f32.mxu1 %vm2351_vm0, %v2352_v1 }
 0x41d   :  { %2155 = vmatprep.subr.bf16.mxu1 %v2350_v0 }
 0x420   :  { %2157 = vmatpush3.bf16.msra.mxu1 %v2399_v12 }
 0x421   :  { %2158 = vmatprep.subr.bf16.mxu1 %v2350_v0 }
 0x424   :  { %2160 = vmatpush3.bf16.msra.mxu1 %v2407_v18 }
 0x425   :  { %2161 = vmatprep.subr.bf16.mxu1 %v2350_v0 }
 0x428   :  { %2163 = vmatpush3.bf16.msra.mxu1 %v2413_v21 }
 0x429   :  { %2176 = vmatprep.subr.bf16.mxu1 %v2350_v0 }
 0x472   :  { %v2564_v23 = vpop.f32.mrb[14].mxu0 }
 0x473   :  { %v909_v24 = vadd.f32 %v2564_v23, %v181_v22  ;;  %v1904_v25 = vpop.f32.mrb[15].mxu0  ;;  %v46_v22 = vld [vmem:[#allocation2 + $0x90] sm:$0xff] }
 0x475   :  { %2303 = vtanh.f32 %v909_v24  ;;  %v47_v24 = vld [vmem:[#allocation2 + $0x98] sm:$0xff] }
 0x476   :  { %v2276_v25 = vpack.c.bf16 %v47_v24, %v46_v22 }
 0x47f   :  { %v2304_v27 = vpop.eup %2303 }
 0x480   :  { %1941 = vmatmul.mubr.msk.f32.vlgmr.msra.gmra.mrb[16].mxu0 %vm199_vm2, %v2304_v27  ;;  %v48_v27 = vld [vmem:[#allocation2 + $0xa0] sm:$0xff] }
 0x481   :  { %2214 = vmatpush3.bf16.msra.mxu0 %v2403_v17  ;;  %1978 = vmatprep.mubr.msk.f32.mxu0 %vm2351_vm0, %v2352_v1 }
 0x482   :  { %2215 = vmatprep.subr.bf16.mxu0 %v2350_v0 }
 0x485   :  { %2217 = vmatpush3.bf16.msra.mxu0 %v2437_v26 }
 0x486   :  { %2218 = vmatprep.subr.bf16.mxu0 %v2350_v0 }
 0x489   :  { %2220 = vmatpush3.bf16.msra.mxu0 %v2452_v32 }
 0x48a   :  { %2221 = vmatprep.subr.bf16.mxu0 %v2350_v0 }
 0x48d   :  { %2223 = vmatpush3.bf16.msra.mxu0 %v2459_v36 }
 0x48e   :  { %2236 = vmatprep.subr.bf16.mxu0 %v2350_v0 }
 0x4ee   :  { %v591_v28 = vpop.f32.mrb[4].mxu1 }
 0x4ef   :  { %671 = vrot.lane.b32.xlu1 %v591_v28, %s2353_s0  ;;  %v1847_v29 = vpop.f32.mrb[5].mxu1  ;;  %v49_v28 = vld [vmem:[#allocation2 + $0xa8] sm:$0xff] }
 0x4f0   :  { %v2279_v29 = vpack.c.bf16 %v49_v28, %v48_v27 }
 0x553   :  { %v2581_v31 = vpop.f32.mrb[16].mxu0 }
 0x554   :  { %v1066_v33 = vadd.f32 %v2581_v31, %v186_v30  ;;  %v1942_v34 = vpop.f32.mrb[17].mxu0  ;;  %v51_v30 = vld [vmem:[#allocation2 + $0xb8] sm:$0xff] }
 0x556   :  { %2305 = vtanh.f32 %v1066_v33 }
 0x560   :  { %v2306_v35 = vpop.eup %2305 }
 0x561   :  { %v672_v38 = vpop.permute.xlu1 %671  ;;  %1979 = vmatmul.mubr.msk.f32.vlgmr.msra.gmra.mrb[18].mxu0 %vm199_vm2, %v2306_v35 }
 0x562   :  { %v674_v39 = vadd.f32 %v672_v38, %v666_v9  ;;  %2238 = vmatpush3.bf16.msra.mxu0 %v2403_v17  ;;  %2016 = vmatprep.mubr.msk.f32.mxu0 %vm2351_vm0, %v2352_v1 }
 0x563   :  { %2239 = vmatprep.subr.bf16.mxu0 %v2350_v0 }
 0x564   :  { %v675_v40 = vadd.f32 %v674_v39, %v2498_v54 }
 0x566   :  { %2307 = vtanh.f32 %v675_v40  ;;  %2241 = vmatpush3.bf16.msra.mxu0 %v2437_v26  ;;  %v1572_v40 = vld [vmem:[%s2699_s2 + $0x2] ss:$0 sm:$0xff] }
 0x567   :  { %2242 = vmatprep.subr.bf16.mxu0 %v2350_v0 }
 0x56a   :  { %2244 = vmatpush3.bf16.msra.mxu0 %v2452_v32 }
 0x56b   :  { %2245 = vmatprep.subr.bf16.mxu0 %v2350_v0 }
 0x56e   :  { %2247 = vmatpush3.bf16.msra.mxu0 %v2459_v36 }
 0x56f   :  { %2260 = vmatprep.subr.bf16.mxu0 %v2350_v0 }
 0x570   :  { %v2308_v41 = vpop.eup %2307 }
 0x571   :  { %678 = vrot.lane.b32.xlu0 %v2308_v41, %s2353_s0 }
 0x5e3   :  { %v679_v42 = vpop.permute.xlu0 %678 }
 0x5e4   :  { %1884 = vmatmul.mubr.msk.f32.vlgmr.msra.gmra.mrb[6].mxu1 %vm199_vm2, %v679_v42 }
 0x5e5   :  { %2178 = vmatpush3.bf16.msra.mxu1 %v2393_v8  ;;  %1921 = vmatprep.mubr.msk.f32.mxu1 %vm2351_vm0, %v2352_v1 }
 0x5e6   :  { %2179 = vmatprep.subr.bf16.mxu1 %v2350_v0 }
 0x5e9   :  { %2181 = vmatpush3.bf16.msra.mxu1 %v2399_v12 }
 0x5ea   :  { %2182 = vmatprep.subr.bf16.mxu1 %v2350_v0 }
 0x5ed   :  { %2184 = vmatpush3.bf16.msra.mxu1 %v2407_v18 }
 0x5ee   :  { %2185 = vmatprep.subr.bf16.mxu1 %v2350_v0 }
 0x5f1   :  { %2187 = vmatpush3.bf16.msra.mxu1 %v2413_v21 }
 0x5f2   :  { %2200 = vmatprep.subr.bf16.mxu1 %v2350_v0 }
 0x634   :  { %v2610_v44 = vpop.f32.mrb[18].mxu0 }
 0x635   :  { %v1223_v45 = vadd.f32 %v2610_v44, %v191_v43  ;;  %v1980_v46 = vpop.f32.mrb[19].mxu0 }
 0x637   :  { %2309 = vtanh.f32 %v1223_v45 }
 0x641   :  { %v2310_v47 = vpop.eup %2309 }
 0x642   :  { %2017 = vmatmul.mubr.msk.f32.vlgmr.msra.gmra.mrb[20].mxu0 %vm199_vm2, %v2310_v47 }
 0x643   :  { %2262 = vmatpush3.bf16.msra.mxu0 %v2403_v17  ;;  %2054 = vmatprep.mubr.msk.f32.mxu0 %vm2351_vm0, %v2352_v1  ;;  %v196_v17 = vadd.f32 %v2493_v49, %v2470_v37 }
 0x644   :  { %2263 = vmatprep.subr.bf16.mxu0 %v2350_v0 }
 0x647   :  { %2265 = vmatpush3.bf16.msra.mxu0 %v2437_v26 }
 0x648   :  { %2266 = vmatprep.subr.bf16.mxu0 %v2350_v0 }
 0x64b   :  { %2268 = vmatpush3.bf16.msra.mxu0 %v2452_v32 }
 0x64c   :  { %2269 = vmatprep.subr.bf16.mxu0 %v2350_v0 }
 0x64f   :  { %2271 = vmatpush3.bf16.msra.mxu0 %v2459_v36 }
 0x6b7   :  { %v748_v48 = vpop.f32.mrb[6].mxu1 }
 0x6b8   :  { %828 = vrot.lane.b32.xlu1 %v748_v48, %s2353_s0  ;;  %v1885_v50 = vpop.f32.mrb[7].mxu1 }
 0x715   :  { %v2626_v51 = vpop.f32.mrb[20].mxu0 }
 0x716   :  { %v1380_v52 = vadd.f32 %v2626_v51, %v196_v17  ;;  %v2018_v26 = vpop.f32.mrb[21].mxu0 }
 0x718   :  { %2311 = vtanh.f32 %v1380_v52 }
 0x722   :  { %v2312_v53 = vpop.eup %2311 }
 0x723   :  { %2055 = vmatmul.mubr.msk.f32.vlgmr.msra.gmra.mrb[22].mxu0 %vm199_vm2, %v2312_v53 }
 0x72a   :  { %v829_v32 = vpop.permute.xlu1 %828 }
 0x72b   :  { %v831_v55 = vadd.f32 %v829_v32, %v2564_v23  ;;  %v2273_v23 = vpack.c.bf16 %v45_v20, %v44_v19 }
 0x72d   :  { %v832_v36 = vadd.f32 %v831_v55, %v2498_v54 }
 0x72f   :  { %2313 = vtanh.f32 %v832_v36 }
 0x739   :  { %v2314_v56 = vpop.eup %2313 }
 0x73a   :  { %835 = vrot.lane.b32.xlu0 %v2314_v56, %s2353_s0 }
 0x7ac   :  { %v836_v57 = vpop.permute.xlu0 %835 }
 0x7ad   :  { %1922 = vmatmul.mubr.msk.f32.vlgmr.msra.gmra.mrb[8].mxu1 %vm199_vm2, %v836_v57 }
 0x7ae   :  { %2202 = vmatpush3.bf16.msra.mxu1 %v2393_v8  ;;  %1959 = vmatprep.mubr.msk.f32.mxu1 %vm2351_vm0, %v2352_v1 }
 0x7af   :  { %2203 = vmatprep.subr.bf16.mxu1 %v2350_v0 }
 0x7b2   :  { %2205 = vmatpush3.bf16.msra.mxu1 %v2399_v12 }
 0x7b3   :  { %2206 = vmatprep.subr.bf16.mxu1 %v2350_v0 }
 0x7b6   :  { %2208 = vmatpush3.bf16.msra.mxu1 %v2407_v18 }
 0x7b7   :  { %2209 = vmatprep.subr.bf16.mxu1 %v2350_v0 }
 0x7ba   :  { %2211 = vmatpush3.bf16.msra.mxu1 %v2413_v21 }
 0x7bb   :  { %2224 = vmatprep.subr.bf16.mxu1 %v2350_v0 }
 0x7f6   :  { %v2644_v37 = vpop.f32.mrb[22].mxu0 }
 0x7f7   :  { %v2056_v49 = vpop.f32.mrb[23].mxu0 }
 0x880   :  { %v905_v58 = vpop.f32.mrb[8].mxu1 }
 0x881   :  { %985 = vrot.lane.b32.xlu1 %v905_v58, %s2353_s0  ;;  %v1923_v59 = vpop.f32.mrb[9].mxu1 }
 0x8f3   :  { %v986_v60 = vpop.permute.xlu1 %985 }
 0x8f4   :  { %v988_v61 = vadd.f32 %v986_v60, %v2581_v31 }
 0x8f6   :  { %v989_v62 = vadd.f32 %v988_v61, %v2498_v54 }
 0x8f8   :  { %2315 = vtanh.f32 %v989_v62 }
 0x902   :  { %v2316_v63 = vpop.eup %2315 }
 0x903   :  { %992 = vrot.lane.b32.xlu0 %v2316_v63, %s2353_s0 }
 0x975   :  { %v993_v2 = vpop.permute.xlu0 %992 }
 0x976   :  { %1960 = vmatmul.mubr.msk.f32.vlgmr.msra.gmra.mrb[10].mxu1 %vm199_vm2, %v993_v2 }
 0x977   :  { %2226 = vmatpush3.bf16.msra.mxu1 %v2393_v8  ;;  %1997 = vmatprep.mubr.msk.f32.mxu1 %vm2351_vm0, %v2352_v1 }
 0x978   :  { %2227 = vmatprep.subr.bf16.mxu1 %v2350_v0 }
 0x97b   :  { %2229 = vmatpush3.bf16.msra.mxu1 %v2399_v12 }
 0x97c   :  { %2230 = vmatprep.subr.bf16.mxu1 %v2350_v0 }
 0x97f   :  { %2232 = vmatpush3.bf16.msra.mxu1 %v2407_v18 }
 0x980   :  { %2233 = vmatprep.subr.bf16.mxu1 %v2350_v0 }
 0x983   :  { %2235 = vmatpush3.bf16.msra.mxu1 %v2413_v21 }
 0x984   :  { %2248 = vmatprep.subr.bf16.mxu1 %v2350_v0 }
 0xa49   :  { %v1062_v3 = vpop.f32.mrb[10].mxu1 }
 0xa4a   :  { %1142 = vrot.lane.b32.xlu1 %v1062_v3, %s2353_s0  ;;  %v1961_v4 = vpop.f32.mrb[11].mxu1 }
 0xabc   :  { %v1143_v5 = vpop.permute.xlu1 %1142 }
 0xabd   :  { %v1145_v6 = vadd.f32 %v1143_v5, %v2610_v44 }
 0xabf   :  { %v1146_v7 = vadd.f32 %v1145_v6, %v2498_v54 }
 0xac1   :  { %2317 = vtanh.f32 %v1146_v7 }
 0xacb   :  { %v2318_v9 = vpop.eup %2317 }
 0xacc   :  { %1149 = vrot.lane.b32.xlu0 %v2318_v9, %s2353_s0 }
 0xb3e   :  { %v1150_v10 = vpop.permute.xlu0 %1149 }
 0xb3f   :  { %1998 = vmatmul.mubr.msk.f32.vlgmr.msra.gmra.mrb[12].mxu1 %vm199_vm2, %v1150_v10 }
 0xb40   :  { %2250 = vmatpush3.bf16.msra.mxu1 %v2393_v8  ;;  %2035 = vmatprep.mubr.msk.f32.mxu1 %vm2351_vm0, %v2352_v1 }
 0xb41   :  { %2251 = vmatprep.subr.bf16.mxu1 %v2350_v0 }
 0xb44   :  { %2253 = vmatpush3.bf16.msra.mxu1 %v2399_v12 }
 0xb45   :  { %2254 = vmatprep.subr.bf16.mxu1 %v2350_v0 }
 0xb48   :  { %2256 = vmatpush3.bf16.msra.mxu1 %v2407_v18 }
 0xb49   :  { %2257 = vmatprep.subr.bf16.mxu1 %v2350_v0 }
 0xb4c   :  { %2259 = vmatpush3.bf16.msra.mxu1 %v2413_v21 }
 0xb4d   :  { %2272 = vmatprep.subr.bf16.mxu1 %v2350_v0 }
 0xc12   :  { %v1219_v11 = vpop.f32.mrb[12].mxu1 }
 0xc13   :  { %1299 = vrot.lane.b32.xlu1 %v1219_v11, %s2353_s0  ;;  %v1999_v8 = vpop.f32.mrb[13].mxu1 }
 0xc85   :  { %v1300_v13 = vpop.permute.xlu1 %1299 }
 0xc86   :  { %v1302_v14 = vadd.f32 %v1300_v13, %v2626_v51 }
 0xc88   :  { %v1303_v15 = vadd.f32 %v1302_v14, %v2498_v54 }
 0xc8a   :  { %2319 = vtanh.f32 %v1303_v15 }
 0xc94   :  { %v2320_v12 = vpop.eup %2319 }
 0xc95   :  { %1306 = vrot.lane.b32.xlu0 %v2320_v12, %s2353_s0 }
 0xd07   :  { %v1307_v18 = vpop.permute.xlu0 %1306 }
 0xd08   :  { %2036 = vmatmul.mubr.msk.f32.vlgmr.msra.gmra.mrb[14].mxu1 %vm199_vm2, %v1307_v18 }
 0xd09   :  { %2073 = vmatprep.mubr.msk.f32.mxu1 %vm2351_vm0, %v2352_v1  ;;  %2274 = vmatpush3.bf16.msra.mxu1 %v2273_v23  ;;  %v50_v1 = vld [vmem:[#allocation2 + $0xb0] sm:$0xff] }
 0xd0a   :  { %2275 = vmatprep.subr.bf16.mxu1 %v2350_v0  ;;  %v2282_v31 = vpack.c.bf16 %v51_v30, %v50_v1 }
 0xd0d   :  { %2277 = vmatpush3.bf16.msra.mxu1 %v2276_v25 }
 0xd0e   :  { %2278 = vmatprep.subr.bf16.mxu1 %v2350_v0 }
 0xd11   :  { %2280 = vmatpush3.bf16.msra.mxu1 %v2279_v29 }
 0xd12   :  { %2281 = vmatprep.subr.bf16.mxu1 %v2350_v0 }
 0xd15   :  { %2283 = vmatpush3.bf16.msra.mxu1 %v2282_v31 }
 0xddb   :  { %v1376_v21 = vpop.f32.mrb[14].mxu1 }
 0xddc   :  { %1456 = vrot.lane.b32.xlu1 %v1376_v21, %s2353_s0  ;;  %v2037_v16 = vpop.f32.mrb[15].mxu1 }
 0xe4e   :  { %v1457_v33 = vpop.permute.xlu1 %1456 }
 0xe4f   :  { %v1459_v34 = vadd.f32 %v1457_v33, %v2644_v37 }
 0xe51   :  { %v1460_v35 = vadd.f32 %v1459_v34, %v2498_v54 }
 0xe53   :  { %2321 = vtanh.f32 %v1460_v35 }
 0xe5d   :  { %v2322_v38 = vpop.eup %2321 }
 0xe5e   :  { %1467 = vrot.lane.b32.xlu0 %v2322_v38, %s2353_s0 }
 0xed0   :  { %v1468_v39 = vpop.permute.xlu0 %1467 }
 0xed1   :  { %2074 = vmatmul.mubr.msk.f32.vlgmr.msra.gmra.mrb[16].mxu1 %vm199_vm2, %v1468_v39 }
 0xfa4   :  { %v1537_v41 = vpop.f32.mrb[16].mxu1 }
 0xfa5   :  { %v1538_v42 = vadd.f32 %v1572_v40, %v1537_v41  ;;  %v2075_v0 = vpop.f32.mrb[17].mxu1 }
 0xfa7   :  { %1541 = vst [vmem:[%s2700_s3] sm:$0xff] %v1538_v42 }
 0xfa8   :  { %1546 = vsyncpa [#allocation3], 1 }

</bundles_post_ra>
